<compile_context>
chip_gen: v7x
topology: tpu7x:2x2x1
jax: 0.10.0
libtpu: 0.0.40
codegen_flags: <defaults>
</compile_context>

<pallas_src>
import functools

import jax
import jax.numpy as jnp
from jax.experimental import pallas as pl
from jax.experimental.pallas import tpu as pltpu

BN_EPSILON = 0.001


def fold_batchnorm_into_linear(params, matmul_dtype=jnp.float32):
  """One-time O(D^2) fold of eval-mode BatchNorm into the linear layer.

  Call once at parameter-preparation time (NOT per forward pass).

  Returns:
    w_fold: (D_in, D_out) in `matmul_dtype`  (already transposed for x @ W)
    b_fold: (1, D_out) float32
  """
  gamma = params["bn_weight"].astype(jnp.float32)
  beta = params["bn_bias"].astype(jnp.float32)
  mean = params["running_mean"].astype(jnp.float32)
  var = params["running_var"].astype(jnp.float32)
  w = params["lin_weight"].astype(jnp.float32)          # (D_out, D_in)
  b = params["lin_bias"].astype(jnp.float32)            # (D_out,)

  v = (1.0 + gamma) * jax.lax.rsqrt(var + BN_EPSILON)   # (D_in,)
  w_t = w.T                                             # (D_in, D_out)
  w_fold = v[:, None] * w_t                             # (D_in, D_out)
  b_fold = (beta - mean * v) @ w_t + b                  # (D_out,)
  return w_fold.astype(matmul_dtype), b_fold.reshape(1, -1)


def _ffn_kernel(x_ref, pad_ref, w_ref, b_ref, o_ref):
  # One grid step == one (TT, D) row tile of the flattened (B*T, D) input.
  mask = 1.0 - pad_ref[...]                              # (TT, 1) f32

  # Single MXU matmul with folded BN; f32 accumulate. Operands arrive already
  # in the compute dtype (no per-element cast inside the kernel).
  y = jnp.dot(x_ref[...], w_ref[...], preferred_element_type=jnp.float32)
  y = y + b_ref[...]                                     # (TT, D) + (1, D)

  # ReLU (use_tanh=False), then padding mask. Dropout is identity in eval.
  y = jnp.maximum(y, 0.0) * mask

  o_ref[...] = y.astype(o_ref.dtype)


@functools.partial(jax.jit, static_argnames=("t_block", "out_dtype"))
def feed_forward_module(inputs, input_paddings, w_fold, b_fold, *,
                        t_block=512, out_dtype=None):
  """inputs: (B, T, D); input_paddings: (B, T) float (1.0 = padded frame).

  w_fold / b_fold come from `fold_batchnorm_into_linear` (precomputed once).
  Activations are streamed in w_fold.dtype (bf16 recommended on v5e/v6e/v7x);
  the matmul accumulates in f32.  t_block: rows per grid step (multiple of 8);
  512-1024 is the sweet spot on v6e/v7x, 128-256 on v5e.
  """
  B, T, D = inputs.shape
  rows = B * T
  compute_dtype = w_fold.dtype
  if out_dtype is None:
    out_dtype = inputs.dtype

  assert t_block % 8 == 0, "t_block must be sublane-aligned (multiple of 8)"
  tb = t_block if rows >= t_block else rows              # tiny inputs: 1 tile
  n_tiles = pl.cdiv(rows, tb)                            # partial last tile OK

  # Flatten (B,T,D) -> (B*T,D): free view in HBM. Cast activations to the
  # compute dtype at the boundary (halves x DMA bytes on the bf16 path).
  x2 = inputs.reshape(rows, D).astype(compute_dtype)
  pad2 = input_paddings.reshape(rows, 1).astype(jnp.float32)

  itemsize = jnp.dtype(compute_dtype).itemsize
  cost = pl.CostEstimate(
      flops=2 * rows * D * D,
      transcendentals=0,
      bytes_accessed=(rows * D * itemsize                     # x
                      + D * D * itemsize                      # W (resident)
                      + D * 4 + rows * 4                      # bias + paddings
                      + rows * D * jnp.dtype(out_dtype).itemsize),  # y
  )

  out2 = pl.pallas_call(
      _ffn_kernel,
      out_shape=jax.ShapeDtypeStruct((rows, D), out_dtype),
      grid_spec=pltpu.PrefetchScalarGridSpec(
          num_scalar_prefetch=0,
          grid=(n_tiles,),
          in_specs=[
              pl.BlockSpec((tb, D), lambda i: (i, 0)),    # activations
              pl.BlockSpec((tb, 1), lambda i: (i, 0)),    # paddings
              pl.BlockSpec((D, D), lambda i: (0, 0)),     # folded W (resident)
              pl.BlockSpec((1, D), lambda i: (0, 0)),     # folded bias
          ],
          out_specs=pl.BlockSpec((tb, D), lambda i: (i, 0)),
      ),
      compiler_params=pltpu.CompilerParams(
          dimension_semantics=("parallel",)),
      cost_estimate=cost,
  )(x2, pad2, w_fold, b_fold)

  return out2.reshape(B, T, D)


def _reference(inputs, input_paddings, params):
  """Plain-JAX reference matching the PyTorch forward (eval mode, unfolded)."""
  mask = (1.0 - input_paddings)[:, :, None]
  mean = params["running_mean"]
  var = params["running_var"]
  v = (1.0 + params["bn_weight"]) * jax.lax.rsqrt(var + BN_EPSILON)
  bn = (inputs - mean) * v + params["bn_bias"]
  bn = bn * mask
  y = bn @ params["lin_weight"].T + params["lin_bias"]
  y = jnp.maximum(y, 0.0)
  y = y * mask
  return y


if __name__ == "__main__":
  # Small but representative shapes: D is lane-dense (multiple of 128).
  B, T, D = 2, 24, 128          # rows = 48

  key = jax.random.PRNGKey(0)
  k_x, k_w, k_b, k_g, k_beta, k_var = jax.random.split(key, 6)

  x = jax.random.normal(k_x, (B, T, D), dtype=jnp.float32)
  # Last 3 frames of each sequence are padding (1.0 = padded).
  paddings = jnp.concatenate(
      [jnp.zeros((B, T - 3), jnp.float32), jnp.ones((B, 3), jnp.float32)],
      axis=1)

  params = {
      "bn_weight": 0.1 * jax.random.normal(k_g, (D,), jnp.float32),
      "bn_bias": 0.1 * jax.random.normal(k_beta, (D,), jnp.float32),
      "running_mean": jnp.zeros((D,), jnp.float32),
      "running_var": jnp.ones((D,), jnp.float32)
      + 0.01 * jax.random.uniform(k_var, (D,), jnp.float32),
      # LazyLinear(encoder_dim): weight (out, in) = (D, D), bias (D,)
      "lin_weight": (jax.random.normal(k_w, (D, D), jnp.float32)
                     / jnp.sqrt(D).astype(jnp.float32)),
      "lin_bias": 0.1 * jax.random.normal(k_b, (D,), jnp.float32),
  }

  ref = _reference(x, paddings, params)

  # --- f32 path, row-tile divides B*T exactly (48 / 8 = 6 tiles) ---
  w_f32, b_f32 = fold_batchnorm_into_linear(params, matmul_dtype=jnp.float32)
  out_f32 = feed_forward_module(x, paddings, w_f32, b_f32, t_block=8)
  out_f32 = jax.block_until_ready(out_f32)
  assert out_f32.shape == (B, T, D)
  assert jnp.allclose(out_f32, ref, atol=1e-4, rtol=1e-4), "f32 mismatch"

  # --- f32 path, partial last tile (48 rows, tb=32 -> 2 tiles, second partial) ---
  out_part = feed_forward_module(x, paddings, w_f32, b_f32, t_block=32)
  out_part = jax.block_until_ready(out_part)
  assert jnp.allclose(out_part, ref, atol=1e-4, rtol=1e-4), "partial-tile mismatch"

  # --- bf16 streaming path (bf16 x/W operands, f32 accumulate, f32 output) ---
  w_bf16, b_bf = fold_batchnorm_into_linear(params, matmul_dtype=jnp.bfloat16)
  out_bf16 = feed_forward_module(x, paddings, w_bf16, b_bf, t_block=16)
  out_bf16 = jax.block_until_ready(out_bf16)
  assert jnp.allclose(out_bf16, ref, atol=5e-2, rtol=5e-2), "bf16 mismatch"

  # --- bf16 in / bf16 out (halves both x read and y write HBM traffic) ---
  out_bf_out = feed_forward_module(x, paddings, w_bf16, b_bf, t_block=16,
                                   out_dtype=jnp.bfloat16)
  out_bf_out = jax.block_until_ready(out_bf_out)
  assert out_bf_out.dtype == jnp.bfloat16
  assert jnp.allclose(out_bf_out.astype(jnp.float32), ref,
                      atol=8e-2, rtol=8e-2), "bf16-out mismatch"

  print("KERNEL_OK")
</pallas_src>

<mosaic_0001>
module attributes {stable_mosaic.version = 11 : i64} {
  func.func @_ffn_kernel(%arg0: i32, %arg1: memref<8x128xf32, #tpu.memory_space<vmem>>, %arg2: memref<8x1xf32, #tpu.memory_space<vmem>>, %arg3: memref<128x128xf32, #tpu.memory_space<vmem>>, %arg4: memref<1x128xf32, #tpu.memory_space<vmem>>, %arg5: memref<8x128xf32, #tpu.memory_space<vmem>>) attributes {dimension_semantics = [#tpu.dimension_semantics<parallel>], iteration_bounds = array<i64: 6>, scalar_prefetch = 0 : i64, scratch_operands = 0 : i64, tpu.core_type = #tpu.core_type<tc>, window_params = [{transform_indices = @transform_0, window_bounds = array<i64: 8, 128>}, {transform_indices = @transform_1, window_bounds = array<i64: 8, 1>}, {pipeline_mode = #tpu.pipeline_mode<synchronous>, transform_indices = @transform_2, window_bounds = array<i64: 128, 128>}, {pipeline_mode = #tpu.pipeline_mode<synchronous>, transform_indices = @transform_3, window_bounds = array<i64: 1, 128>}, {transform_indices = @transform_4, window_bounds = array<i64: 8, 128>}]} {
    %c0 = arith.constant 0 : index
    %c0_0 = arith.constant 0 : index
    %0 = vector.load %arg2[%c0, %c0_0] : memref<8x1xf32, #tpu.memory_space<vmem>>, vector<8x1xf32>
    %cst = arith.constant 1.000000e+00 : f32
    %1 = vector.broadcast %cst : f32 to vector<8x1xf32>
    %2 = arith.subf %1, %0 : vector<8x1xf32>
    %c0_1 = arith.constant 0 : index
    %c0_2 = arith.constant 0 : index
    %3 = vector.load %arg1[%c0_1, %c0_2] : memref<8x128xf32, #tpu.memory_space<vmem>>, vector<8x128xf32>
    %c0_3 = arith.constant 0 : index
    %c0_4 = arith.constant 0 : index
    %4 = vector.load %arg3[%c0_3, %c0_4] : memref<128x128xf32, #tpu.memory_space<vmem>>, vector<128x128xf32>
    %cst_5 = arith.constant dense<0.000000e+00> : vector<8x128xf32>
    %5 = tpu.matmul %3, %4, %cst_5 {dimension_numbers = #tpu.dot_dimension_numbers<[1], [0], [0], [1], [0, 0, 1, 1], [], []>} : vector<8x128xf32>, vector<128x128xf32>, vector<8x128xf32> -> vector<8x128xf32>
    %c0_6 = arith.constant 0 : index
    %c0_7 = arith.constant 0 : index
    %6 = vector.load %arg4[%c0_6, %c0_7] : memref<1x128xf32, #tpu.memory_space<vmem>>, vector<1x128xf32>
    %7 = vector.broadcast %6 : vector<1x128xf32> to vector<8x128xf32>
    %8 = arith.addf %5, %7 : vector<8x128xf32>
    %cst_8 = arith.constant 0.000000e+00 : f32
    %9 = vector.broadcast %cst_8 : f32 to vector<8x128xf32>
    %10 = arith.maximumf %8, %9 : vector<8x128xf32>
    %11 = vector.broadcast %2 : vector<8x1xf32> to vector<8x128xf32>
    %12 = arith.mulf %10, %11 : vector<8x128xf32>
    %c0_9 = arith.constant 0 : index
    %c0_10 = arith.constant 0 : index
    %13 = vector.load %arg5[%c0_9, %c0_10] : memref<8x128xf32, #tpu.memory_space<vmem>>, vector<8x128xf32>
    tpu.vector_store %arg5[%c0_9, %c0_10], %12 {strides = array<i32>} : memref<8x128xf32, #tpu.memory_space<vmem>>, vector<8x128xf32>,
    return
  }
  func.func @transform_0(%arg0: i32) -> (i32, i32) {
    %c0_i32 = arith.constant 0 : i32
    %c0_i32_0 = arith.constant 0 : i32
    return %arg0, %c0_i32 : i32, i32
  }
  func.func @transform_1(%arg0: i32) -> (i32, i32) {
    %c0_i32 = arith.constant 0 : i32
    %c0_i32_0 = arith.constant 0 : i32
    return %arg0, %c0_i32 : i32, i32
  }
  func.func @transform_2(%arg0: i32) -> (i32, i32) {
    %c0_i32 = arith.constant 0 : i32
    %c0_i32_0 = arith.constant 0 : i32
    %c0_i32_1 = arith.constant 0 : i32
    return %c0_i32, %c0_i32_0 : i32, i32
  }
  func.func @transform_3(%arg0: i32) -> (i32, i32) {
    %c0_i32 = arith.constant 0 : i32
    %c0_i32_0 = arith.constant 0 : i32
    %c0_i32_1 = arith.constant 0 : i32
    return %c0_i32, %c0_i32_0 : i32, i32
  }
  func.func @transform_4(%arg0: i32) -> (i32, i32) {
    %c0_i32 = arith.constant 0 : i32
    %c0_i32_0 = arith.constant 0 : i32
    return %arg0, %c0_i32 : i32, i32
  }
}

</mosaic_0001>

<bundles_post_ra>
// kernel: feed_forward_module.1
= control target key start
LH: loop header
LB: loop body
LE: loop exit
PB: predicated region body
PF: predicated region fallthrough
CT: control target
= control target key end

     0   :  { %9 = vsyncpa [#allocation3], 0  ;;  %s850_s0 = inlined_call_operand.vmem [shape: f32[48,128], index: 0, kind: input, shape index: {}]   ;;  %s851_s1 = inlined_call_operand.vmem [shape: f32[48,1], index: 1, kind: input, shape index: {}]   ;;  %s852_s2 = inlined_call_operand.hbm [shape: f32[128,128], index: 2, kind: input, shape index: {}]   ;;  %s853_s3 = inlined_call_operand.vmem [shape: f32[1,128], index: 3, kind: input, shape index: {}]   ;;  %s854_s4 = inlined_call_operand.hbm [shape: f32[48,128], index: 4, kind: output, shape index: {}]  }
   0x1   :  { %10 = vsyncpa [#allocation4], 0 }
   0x2   :  { %12 = vsyncpa [#allocation4 + $0x1], 0  ;;  %s702_s15 = smov 0   ;;  %s704_s16 = smov 0  }
   0x3   :  { %s706_s17 = smov 0   ;;  %s708_s18 = smov 0  }
   0x4 LB: > { %s723_s19 = sadd.s32 4294967295, %s667_s18   ;;  %s426_s20 = sadd.s32 4294967294, %s667_s18   ;;  %s667_s18 = sphi %s708_s18, %s870_s18   ;;  %s663_s17 = sphi %s706_s17, %s869_s17   ;;  %s659_s16 = sphi %s704_s16, %s868_s16   ;;  %s655_s15 = sphi %s702_s15, %s867_s15  }
   0x5   : > { %s727_s21 = sadd.s32 1, %s667_s18   ;;  %s119_s22 = sadd.s32 1, %s663_s17 }
   0x6   : > { %s116_s23 = ssub.s32 %s667_s18, %s727_s21  ;;  %p129_p0 = scmp.ne.s32.totalorder %s663_s17, %s659_s16 }
   0x7   : > { %p117_p1 = scmp.eq.s32.totalorder %s116_s23, 0  ;;  %p130_p2 = scmp.eq.s32.totalorder %s723_s19, 5 }
   0x8   : > { %p135_p3 = scmp.ne.s32.totalorder %s659_s16, %s655_s15  ;;  %p136_p4 = scmp.eq.s32.totalorder %s426_s20, 5 }
   0x9   : > { %s738_s24 = scalar_select %p117_p1, %s663_s17, %s119_s22  }
   0xa   : > { %p740_p5 = por %p130_p2, %p129_p0  ;;  %p744_p6 = por %p136_p4, %p135_p3 }
   0xb   : > { %p427_p7 = scmp.ge.s32.totalorder %s667_s18, 1  ;;  %p143_p8 = scmp.lt.s32.totalorder %s667_s18, 7 }
   0xc   : > { %s858_s25 = scalar_select %p740_p5, 1, 0 }
   0xd   : > { %s859_s26 = scalar_select %p744_p6, 1, 0 }
   0xe   : > { %p855_p9 = scmp.eq.s32.totalorder %s723_s19, 0  ;;  %p751_p10 = pnand %p427_p7, %p143_p8 }
   0xf   : > { %s669_s28 = smov [#allocation2]   ;;  %s573_s7 = scalar_lea.hbm %s852_s2, 2048 }
  0x10   : > { %s860_s27 = scalar_select %p751_p10, 1, 0 }
  0x11   : > { %s155_s29 = sshll.u32 %s669_s28, 4  ;;  %p522_p11 = pneg %p751_p10  ;;  %s156_s29 = int_to_ptr.vmem [resolvable:$true] %s155_s29 }
  0x12   : > { %p574_p13 = scmp.ne.s32.totalorder %s852_s2, %s573_s7  ;;  %p580_p3 = scmp.lt.u32.totalorder %s573_s7, %s852_s2 }
  0x13   : > { %p759_p12 = pnand %p855_p9, %p522_p11 }
  0x15   : > { %p575_p0 = pneg %p759_p12 }
  0x17   : > { %p576_p1 = pnand %p575_p0, %p574_p13 }
  0x19   : > { %p577_p2 = pneg %p576_p1 }
  0x1b   : > { %p582_p4 = pnand %p580_p3, %p577_p2 }
  0x1d   : > { %585 = shalt.err (!%p582_p4)
}
  0x1e   : > { %s586_s12 = scalar_lea.vmem %s156_s29, 2048  ;;  %p594_p9 = scmp.lt.s32.totalorder %s156_s29, %s156_s29 }
  0x1f   : > { %p587_p7 = scmp.ne.s32.totalorder %s156_s29, %s586_s12  ;;  %p595_p6 = scmp.lt.s32.totalorder %s586_s12, %s586_s12 }
  0x21   : > { %p589_p8 = pnand %p587_p7, %p575_p0  ;;  %p596_p5 = por %p595_p6, %p594_p9 }
  0x23   : > { %p590_p11 = pneg %p589_p8 }
  0x25   : > { %p597_p10 = pnand %p596_p5, %p590_p11 }
  0x27   : > { %600 = shalt.err (!%p597_p10)
}
  0x28   : > { %s670_s13 = smov 128   ;;  %s671_s14 = smov 8  }
  0x29   : > { %525 = dma.hbm_to_vmem [thread:$0]  (!%p759_p12), %s852_s2, 2048, %s156_s29, [#allocation3], %s670_s13, %s670_s13, %s671_s14  }
  0x2a   : > { %p862_p13 = scmp.ne.s32.totalorder %s860_s27, 0 }
  0x2b   : > { %p863_p1 = scmp.eq.s32.totalorder (!%p862_p13), %s723_s19, 0 }
  0x2c   : > { %188 = sbr.rel (%p862_p13) target bundleno = 319 (0x13f), region = 36 }
  0x33   : > { %646 = dma.done.wait (%p863_p1), [#allocation3], 2048   ;;  %p864_p0 = pmov %p863_p1 }
  0x34   : > { %p217_p5 = scmp.lt.s32.totalorder %s723_s19, 5  ;;  %v672_v0 = vmov 0.0|0.0   ;;  %vm673_vm0 = vmmov 0   ;;  %v674_v1 = vmov 0.0   ;;  %v675_v2 = vmov 0   ;;  %v228_v3 = vld [vmem:[#allocation2] sm:$0xff] }
  0x35   : > { %648 = vsyncadd (%p864_p0), [#allocation3], 4294965248  ;;  %492 = vmatprep.subr.bf16.mxu0 %v672_v0  ;;  %489 = vmatprep.mubr.msk.f32.mxu0 %vm673_vm0, %v674_v1  ;;  %v229_v4 = vld [vmem:[#allocation2 + $0x8] sm:$0xff]  ;;  %v230_v5 = vld [vmem:[#allocation2 + $0x10] sm:$0xff]  ;;  %s214_s8 = sand.u32 1, %s659_s16   ;;  %s437_s12 = sshll.u32 %s723_s19, 7 }
  0x36   : > { %572 = vset.pattern.permute.xlu0 %v675_v2  ;;  %s787_s23 = scalar_select %p217_p5, %s723_s19, 5  ;;  %v493_v6 = vpack.c.bf16 %v229_v4, %v228_v3  ;;  %v231_v7 = vld [vmem:[#allocation2 + $0x18] sm:$0xff]  ;;  %v232_v9 = vld [vmem:[#allocation2 + $0x20] sm:$0xff]  ;;  %v233_v10 = vld [vmem:[#allocation2 + $0x28] sm:$0xff] }
  0x37   : > { %v496_v8 = vpack.c.bf16 %v231_v7, %v230_v5  ;;  %v499_v13 = vpack.c.bf16 %v233_v10, %v232_v9  ;;  %v234_v14 = vld [vmem:[#allocation2 + $0x30] sm:$0xff]  ;;  %v235_v15 = vld [vmem:[#allocation2 + $0x38] sm:$0xff]  ;;  %v236_v17 = vld [vmem:[#allocation2 + $0x40] sm:$0xff]  ;;  %s432_s9 = sshll.u32 %s214_s8, 3  ;;  %p865_p9 = scmp.ne.s32.totalorder %s858_s25, 0 }
  0x38   : > { %s433_s27 = sshll.u32 %s787_s23, 3  ;;  %494 = vmatpush3.bf16.msra.mxu0 %v493_v6  ;;  %v502_v16 = vpack.c.bf16 %v235_v15, %v234_v14  ;;  %v237_v18 = vld [vmem:[#allocation2 + $0x48] sm:$0xff]  ;;  %v238_v20 = vld [vmem:[#allocation2 + $0x50] sm:$0xff]  ;;  %v239_v21 = vld [vmem:[#allocation2 + $0x58] sm:$0xff]  ;;  %s216_s13 = scalar_lea.vmem [#allocation5], %s432_s9 }
  0x39   : > { %s224_s30 = scalar_lea.vmem %s851_s1, %s433_s27  ;;  %495 = vmatprep.subr.bf16.mxu0 %v672_v0  ;;  %v505_v19 = vpack.c.bf16 %v237_v18, %v236_v17  ;;  %v508_v22 = vpack.c.bf16 %v239_v21, %v238_v20  ;;  %v240_v23 = vld [vmem:[#allocation2 + $0x60] sm:$0xff]  ;;  %v241_v24 = vld [vmem:[#allocation2 + $0x68] sm:$0xff]  ;;  %v242_v26 = vld [vmem:[#allocation2 + $0x70] sm:$0xff]  ;;  %s220_s7 = scalar_lea.vmem %s850_s0, %s433_s27 }
  0x3a   : > { %v225_v11 = vld [vmem:[%s224_s30] sm:$0xff]  ;;  %v511_v25 = vpack.c.bf16 %v241_v24, %v240_v23  ;;  %v243_v27 = vld [vmem:[#allocation2 + $0x78] sm:$0xff]  ;;  %s343_s14 = sshll.u32 %s216_s13, 4  ;;  %s808_s23 = scalar_lea.hbm %s854_s4, %s437_s12  ;;  %s810_s14 = int_to_ptr.vmem [resolvable:$true] %s343_s14 }
  0x3b   : > { %v226_v12 = vsub.f32 1.0, %v225_v11  ;;  %v514_v28 = vpack.c.bf16 %v243_v27, %v242_v26  ;;  %v227_v29 = vld [vmem:[%s220_s7] sm:$0xff]  ;;  %s330_s27 = scalar_lea.sflag [#allocation4], %s214_s8  ;;  %s601_s28 = scalar_lea.vmem %s810_s14, 128 }
  0x3c   : > { %497 = vmatpush3.bf16.msra.mxu0 %v496_v8  ;;  %v435_v30 = vld [vmem:[%s853_s3] ss:$0 sm:$0xff]  ;;  %p602_p6 = scmp.ne.s32.totalorder %s810_s14, %s601_s28  ;;  %s676_s19 = smov [#allocation5]  }
  0x3d   : > { %498 = vmatprep.subr.bf16.mxu0 %v672_v0  ;;  %324 = vperm.xlu0 %572, %v226_v12   ;;  %s605_s29 = sshll.u32 %s676_s19, 4  ;;  %s606_s29 = int_to_ptr.vmem [resolvable:$false] %s605_s29 }
  0x3e   : > { %p603_p10 = pnand %p602_p6, %p865_p9  ;;  %s607_s30 = scalar_lea.vmem %s606_s29, 256 }
  0x3f   : > { %p608_p2 = scmp.lt.s32.totalorder %s810_s14, %s606_s29  ;;  %p609_p3 = scmp.lt.s32.totalorder %s607_s30, %s601_s28 }
  0x40   : > { %500 = vmatpush3.bf16.msra.mxu0 %v499_v13  ;;  %p604_p12 = pneg %p603_p10 }
  0x41   : > { %501 = vmatprep.subr.bf16.mxu0 %v672_v0  ;;  %p610_p4 = por %p609_p3, %p608_p2 }
  0x43   : > { %p611_p7 = pnand %p610_p4, %p604_p12 }
  0x44   : > { %503 = vmatpush3.bf16.msra.mxu0 %v502_v16 }
  0x45   : > { %504 = vmatprep.subr.bf16.mxu0 %v672_v0 }
  0x48   : > { %506 = vmatpush3.bf16.msra.mxu0 %v505_v19 }
  0x49   : > { %507 = vmatprep.subr.bf16.mxu0 %v672_v0 }
  0x4c   : > { %509 = vmatpush3.bf16.msra.mxu0 %v508_v22 }
  0x4d   : > { %510 = vmatprep.subr.bf16.mxu0 %v672_v0 }
  0x50   : > { %512 = vmatpush3.bf16.msra.mxu0 %v511_v25 }
  0x51   : > { %513 = vmatprep.subr.bf16.mxu0 %v672_v0 }
  0x54   : > { %515 = vmatpush3.bf16.msra.mxu0 %v514_v28 }
  0x57   : > { %490 = vmatmul.mubr.f32.vlgmr.msra.gmra.mrb[0].mxu0 %v227_v29 }
  0xbc   : > { %v325_v34 = vpop.permute.xlu0 %324 }
 0x12a   : > { %v317_v31 = vpop.f32.mrb[0].mxu0 }
 0x12b   : > { %v318_v32 = vadd.f32 %v435_v30, %v317_v31  ;;  %v491_v33 = vpop.f32.mrb[1].mxu0 }
 0x12d   : > { %v321_v35 = vmax.f32 %v318_v32, 0.0 }
 0x12f   : > { %v327_v36 = vmul.f32 %v325_v34, %v321_v35 }
 0x131   : > { %328 = vst [vmem:[%s216_s13] sm:$0xff] %v327_v36 }
 0x132   : > { %614 = shalt.err (!%p611_p7)
}
 0x133   : > { %s615_s5 = scalar_lea.hbm %s808_s23, 128  ;;  %s619_s8 = scalar_lea.hbm %s854_s4, 768 }
 0x134   : > { %p616_p8 = scmp.ne.s32.totalorder %s808_s23, %s615_s5  ;;  %p620_p1 = scmp.lt.u32.totalorder %s808_s23, %s854_s4 }
 0x135   : > { %p621_p0 = scmp.lt.u32.totalorder %s619_s8, %s615_s5  ;;  %p623_p6 = scmp.lt.u32.totalorder %s615_s5, %s808_s23 }
 0x136   : > { %p617_p11 = pnand %p616_p8, %p865_p9 }
 0x137   : > { %p622_p5 = por %p621_p0, %p620_p1 }
 0x138   : > { %p618_p13 = pneg %p617_p11 }
 0x139   : > { %p624_p10 = por %p623_p6, %p622_p5 }
 0x13b   : > { %p625_p12 = pnand %p624_p10, %p618_p13 }
 0x13d   : > { %628 = shalt.err (!%p625_p12)
}
 0x13e   : > { %520 = dma.vmem_to_hbm [thread:$0]  (%p865_p9), %s810_s14, 128, %s808_s23, %s330_s27  }
 0x13f PF: > { %p532_p2 = scmp.ge.s32.totalorder %s667_s18, 2  ;;  %s355_s11 = sand.u32 1, %s655_s15  }
 0x140   : > { %p866_p3 = scmp.ne.s32.totalorder %s859_s26, 0  ;;  %s356_s12 = scalar_lea.sflag [#allocation4], %s355_s11 }
 0x142   : > { %p527_p4 = pnand %p532_p2, %p866_p3 }
 0x144   : > { %650 = dma.done.wait (!%p527_p4), %s356_s12, 128  }
 0x145   : > { %652 = vsyncadd (!%p527_p4), %s356_s12, 4294967168  ;;  %p15_p7 = scmp.ge.s32.totalorder %s727_s21, 8   ;;  %s867_s15 = smov %s659_s16 }
 0x146   : > { %s868_s16 = smov %s663_s17  ;;  %s869_s17 = smov %s738_s24 }
 0x147   : > { %s870_s18 = smov %s727_s21  ;;  %17 = sbr.rel (!%p15_p7) target bundleno = 4 (0x4), region = 79 }
 0x14e   :  { %361 = vsyncpa [#allocation3], 1 }
 0x14f   :  { %363 = vsyncpa [#allocation3 + $0x1], 1 }
 0x150   :  { %364 = vsyncpa [#allocation4], 1 }
 0x151   :  { %366 = vsyncpa [#allocation4 + $0x1], 1 }

</bundles_post_ra>
